<compile_context>
chip_gen: v5e
topology: v5e:2x2
jax: 0.10.0
libtpu: 0.0.40
codegen_flags: <defaults>
</compile_context>

<pallas_src>
import functools

import jax
import jax.numpy as jnp
from jax.experimental import pallas as pl
from jax.experimental.pallas import tpu as pltpu

_LANES = 128
_SUBLANES = 8


def _round_up(x, m):
    return (x + m - 1) // m * m


def _ciou_kernel(n_ref, pred_ref, tgt_ref, out_ref):
    """One (4, bm, 128) tile of boxes -> running partial sum in SMEM.

    n_ref    : SMEM (1,) int32   true (unpadded) sample count.
    pred_ref : VMEM (4, bm, 128) f32, coordinate-major predicted boxes.
    tgt_ref  : VMEM (4, bm, 128) f32, coordinate-major target boxes.
    out_ref  : SMEM (1, 1) f32   per-parallel-chunk partial sum (accumulator).
    """
    eps = jnp.float32(1e-6)
    gi = pl.program_id(0)        # parallel chunk (maps to a core on v7x)
    ii = pl.program_id(1)        # reduction step within the chunk
    n_inner = pl.num_programs(1)

    @pl.when(ii == 0)
    def _init():
        out_ref[0, 0] = jnp.float32(0.0)

    # Dense (bm, 128) tiles per coordinate -> full vreg occupancy.
    px1 = pred_ref[0]
    py1 = pred_ref[1]
    px2 = pred_ref[2]
    py2 = pred_ref[3]
    tx1 = tgt_ref[0]
    ty1 = tgt_ref[1]
    tx2 = tgt_ref[2]
    ty2 = tgt_ref[3]

    # Intersection / IoU.
    inter_w = jnp.maximum(jnp.minimum(px2, tx2) - jnp.maximum(px1, tx1), 0.0)
    inter_h = jnp.maximum(jnp.minimum(py2, ty2) - jnp.maximum(py1, ty1), 0.0)
    inter_area = inter_w * inter_h
    pred_area = (px2 - px1) * (py2 - py1)
    tgt_area = (tx2 - tx1) * (ty2 - ty1)
    union_area = pred_area + tgt_area - inter_area
    iou = inter_area / jnp.maximum(union_area, eps)

    # Center-distance term.
    dcx = (px1 + px2) * 0.5 - (tx1 + tx2) * 0.5
    dcy = (py1 + py2) * 0.5 - (ty1 + ty2) * 0.5
    center_dist = jnp.sqrt(dcx * dcx + dcy * dcy)
    denom = jnp.maximum(jnp.sqrt(pred_area + tgt_area), eps)

    # Aspect-ratio term (plain division, exactly like the PyTorch reference;
    # degenerate boxes would NaN here in the reference too).
    pred_ar = (px2 - px1) / (py2 - py1)
    tgt_ar = (tx2 - tx1) / (ty2 - ty1)
    ar_diff = jnp.abs(pred_ar - tgt_ar)

    loss = 1.0 - iou + center_dist / denom + ar_diff          # (bm, 128)

    # Mask padded samples out of the reduction (divide by true N in wrapper).
    bm, lanes = loss.shape
    blk = gi * n_inner + ii
    row = jax.lax.broadcasted_iota(jnp.int32, (bm, lanes), 0)
    lane = jax.lax.broadcasted_iota(jnp.int32, (bm, lanes), 1)
    sample_idx = (blk * bm + row) * lanes + lane
    loss = jnp.where(sample_idx < n_ref[0], loss, 0.0)

    out_ref[0, 0] += jnp.sum(loss)


@functools.partial(jax.jit, static_argnames=("block_rows", "num_parallel"))
def ciou_loss(pred_boxes, target_boxes, *, block_rows=256, num_parallel=2):
    """pred_boxes, target_boxes: [N, 4] float arrays. Returns scalar mean CIoU loss."""
    pred = jnp.asarray(pred_boxes, jnp.float32)
    tgt = jnp.asarray(target_boxes, jnp.float32)
    n = pred.shape[0]

    # Tile geometry: rows of 128 samples (lane axis), bm rows per block.
    rows_needed = max(1, pl.cdiv(n, _LANES))
    bm = min(_round_up(block_rows, _SUBLANES), _round_up(rows_needed, _SUBLANES))
    total_blocks = pl.cdiv(rows_needed, bm)
    g = num_parallel if total_blocks >= num_parallel else 1   # 2-core split on v7x
    inner = pl.cdiv(total_blocks, g)
    m_rows = g * inner * bm
    n_pad = m_rows * _LANES

    pad = n_pad - n
    if pad:
        # Benign unit boxes keep padded lanes finite; they are also masked out
        # of the sum inside the kernel.
        pad_box = jnp.broadcast_to(
            jnp.array([0.0, 0.0, 1.0, 1.0], jnp.float32), (pad, 4))
        pred = jnp.concatenate([pred, pad_box], axis=0)
        tgt = jnp.concatenate([tgt, pad_box], axis=0)

    # Coordinate-major, lane-dense layout: [4, M, 128].
    # TODO(synk): at large N this repack is one extra HBM pass on a
    # bandwidth-bound op; ideally the producer emits this layout directly.
    p = pred.T.reshape(4, m_rows, _LANES)
    t = tgt.T.reshape(4, m_rows, _LANES)

    n_arr = jnp.array([n], jnp.int32)

    partials = pl.pallas_call(
        _ciou_kernel,
        out_shape=jax.ShapeDtypeStruct((g, 1), jnp.float32),
        grid_spec=pltpu.PrefetchScalarGridSpec(
            num_scalar_prefetch=1,
            grid=(g, inner),
            in_specs=[
                pl.BlockSpec((4, bm, _LANES),
                             lambda gi, ii, n_ref: (0, gi * inner + ii, 0)),
                pl.BlockSpec((4, bm, _LANES),
                             lambda gi, ii, n_ref: (0, gi * inner + ii, 0)),
            ],
            out_specs=pl.BlockSpec((1, 1), lambda gi, ii, n_ref: (gi, 0),
                                   memory_space=pltpu.SMEM),
        ),
        compiler_params=pltpu.CompilerParams(
            dimension_semantics=("parallel", "arbitrary"),
            vmem_limit_bytes=32 * 1024 * 1024,
        ),
    )(n_arr, p, t)

    # Partials are raw sums over valid samples; divide by the true N once.
    return jnp.sum(partials) / n


def _ciou_loss_ref(pred, tgt):
    # Pure-JAX reference mirroring the PyTorch module, for validation.
    px1, py1, px2, py2 = [pred[:, i] for i in range(4)]
    tx1, ty1, tx2, ty2 = [tgt[:, i] for i in range(4)]
    inter = jnp.maximum(jnp.minimum(px2, tx2) - jnp.maximum(px1, tx1), 0.0) * \
            jnp.maximum(jnp.minimum(py2, ty2) - jnp.maximum(py1, ty1), 0.0)
    pa = (px2 - px1) * (py2 - py1)
    ta = (tx2 - tx1) * (ty2 - ty1)
    iou = inter / jnp.maximum(pa + ta - inter, 1e-6)
    cd = jnp.sqrt(((px1 + px2) / 2 - (tx1 + tx2) / 2) ** 2 +
                  ((py1 + py2) / 2 - (ty1 + ty2) / 2) ** 2)
    ard = jnp.abs((px2 - px1) / (py2 - py1) - (tx2 - tx1) / (ty2 - ty1))
    loss = 1 - iou + cd / jnp.maximum(jnp.sqrt(pa + ta), 1e-6) + ard
    return loss.mean()


if __name__ == "__main__":
    num_samples = 100
    key = jax.random.PRNGKey(0)
    k1, k2, k3, k4 = jax.random.split(key, 4)

    # Well-formed boxes (x2 > x1, y2 > y1): [x1, y1, x2, y2] per row.  Raw
    # uniform corners would make both the kernel AND the PyTorch reference NaN.
    def make_boxes(k_xy, k_wh):
        xy1 = jax.random.uniform(k_xy, (num_samples, 2), minval=0.0, maxval=0.5)
        wh = jax.random.uniform(k_wh, (num_samples, 2), minval=0.1, maxval=0.5)
        return jnp.concatenate([xy1, xy1 + wh], axis=1).astype(jnp.float32)

    pred_boxes = make_boxes(k1, k2)
    target_boxes = make_boxes(k3, k4)

    out = jax.block_until_ready(ciou_loss(pred_boxes, target_boxes))
    ref = _ciou_loss_ref(pred_boxes, target_boxes)
    assert jnp.allclose(out, ref, rtol=1e-5, atol=1e-5), (out, ref)

    print("KERNEL_OK")
</pallas_src>

<mosaic_0001>
module attributes {stable_mosaic.version = 11 : i64} {
  func.func @_ciou_kernel(%arg0: i32, %arg1: i32, %arg2: memref<1xi32, #tpu.memory_space<smem>>, %arg3: memref<4x8x128xf32, #tpu.memory_space<vmem>>, %arg4: memref<4x8x128xf32, #tpu.memory_space<vmem>>, %arg5: memref<1x1xf32, #tpu.memory_space<smem>>) attributes {dimension_semantics = [#tpu.dimension_semantics<parallel>, #tpu.dimension_semantics<arbitrary>], iteration_bounds = array<i64: 1, 1>, scalar_prefetch = 1 : i64, scratch_operands = 0 : i64, tpu.core_type = #tpu.core_type<tc>, window_params = [{transform_indices = @transform_0, window_bounds = array<i64: 4, 8, 128>}, {transform_indices = @transform_1, window_bounds = array<i64: 4, 8, 128>}, {transform_indices = @transform_2, window_bounds = array<i64: 1, 1>}]} {
    %c0_i32 = arith.constant 0 : i32
    %0 = arith.cmpi eq, %arg1, %c0_i32 : i32
    %1 = arith.extui %0 : i1 to i32
    %c0_i32_0 = arith.constant 0 : i32
    %2 = arith.cmpi ne, %1, %c0_i32_0 : i32
    scf.if %2 {
      %cst_36 = arith.constant 0.000000e+00 : f32
      %c0_37 = arith.constant 0 : index
      %c0_38 = arith.constant 0 : index
      %98 = memref.load %arg5[%c0_37, %c0_38] : memref<1x1xf32, #tpu.memory_space<smem>>
      memref.store %cst_36, %arg5[%c0_37, %c0_38] : memref<1x1xf32, #tpu.memory_space<smem>>
    } else {
    }
    %c0 = arith.constant 0 : index
    %c0_1 = arith.constant 0 : index
    %c0_2 = arith.constant 0 : index
    %3 = vector.load %arg3[%c0, %c0_1, %c0_2] : memref<4x8x128xf32, #tpu.memory_space<vmem>>, vector<1x8x128xf32>
    %4 = vector.shape_cast %3 : vector<1x8x128xf32> to vector<8x128xf32>
    %c1 = arith.constant 1 : index
    %c0_3 = arith.constant 0 : index
    %c0_4 = arith.constant 0 : index
    %5 = vector.load %arg3[%c1, %c0_3, %c0_4] : memref<4x8x128xf32, #tpu.memory_space<vmem>>, vector<1x8x128xf32>
    %6 = vector.shape_cast %5 : vector<1x8x128xf32> to vector<8x128xf32>
    %c2 = arith.constant 2 : index
    %c0_5 = arith.constant 0 : index
    %c0_6 = arith.constant 0 : index
    %7 = vector.load %arg3[%c2, %c0_5, %c0_6] : memref<4x8x128xf32, #tpu.memory_space<vmem>>, vector<1x8x128xf32>
    %8 = vector.shape_cast %7 : vector<1x8x128xf32> to vector<8x128xf32>
    %c3 = arith.constant 3 : index
    %c0_7 = arith.constant 0 : index
    %c0_8 = arith.constant 0 : index
    %9 = vector.load %arg3[%c3, %c0_7, %c0_8] : memref<4x8x128xf32, #tpu.memory_space<vmem>>, vector<1x8x128xf32>
    %10 = vector.shape_cast %9 : vector<1x8x128xf32> to vector<8x128xf32>
    %c0_9 = arith.constant 0 : index
    %c0_10 = arith.constant 0 : index
    %c0_11 = arith.constant 0 : index
    %11 = vector.load %arg4[%c0_9, %c0_10, %c0_11] : memref<4x8x128xf32, #tpu.memory_space<vmem>>, vector<1x8x128xf32>
    %12 = vector.shape_cast %11 : vector<1x8x128xf32> to vector<8x128xf32>
    %c1_12 = arith.constant 1 : index
    %c0_13 = arith.constant 0 : index
    %c0_14 = arith.constant 0 : index
    %13 = vector.load %arg4[%c1_12, %c0_13, %c0_14] : memref<4x8x128xf32, #tpu.memory_space<vmem>>, vector<1x8x128xf32>
    %14 = vector.shape_cast %13 : vector<1x8x128xf32> to vector<8x128xf32>
    %c2_15 = arith.constant 2 : index
    %c0_16 = arith.constant 0 : index
    %c0_17 = arith.constant 0 : index
    %15 = vector.load %arg4[%c2_15, %c0_16, %c0_17] : memref<4x8x128xf32, #tpu.memory_space<vmem>>, vector<1x8x128xf32>
    %16 = vector.shape_cast %15 : vector<1x8x128xf32> to vector<8x128xf32>
    %c3_18 = arith.constant 3 : index
    %c0_19 = arith.constant 0 : index
    %c0_20 = arith.constant 0 : index
    %17 = vector.load %arg4[%c3_18, %c0_19, %c0_20] : memref<4x8x128xf32, #tpu.memory_space<vmem>>, vector<1x8x128xf32>
    %18 = vector.shape_cast %17 : vector<1x8x128xf32> to vector<8x128xf32>
    %19 = arith.minimumf %8, %16 : vector<8x128xf32>
    %20 = arith.maximumf %4, %12 : vector<8x128xf32>
    %21 = arith.subf %19, %20 : vector<8x128xf32>
    %cst = arith.constant 0.000000e+00 : f32
    %22 = vector.broadcast %cst : f32 to vector<8x128xf32>
    %23 = arith.maximumf %21, %22 : vector<8x128xf32>
    %24 = arith.minimumf %10, %18 : vector<8x128xf32>
    %25 = arith.maximumf %6, %14 : vector<8x128xf32>
    %26 = arith.subf %24, %25 : vector<8x128xf32>
    %cst_21 = arith.constant 0.000000e+00 : f32
    %27 = vector.broadcast %cst_21 : f32 to vector<8x128xf32>
    %28 = arith.maximumf %26, %27 : vector<8x128xf32>
    %29 = arith.mulf %23, %28 : vector<8x128xf32>
    %30 = arith.subf %8, %4 : vector<8x128xf32>
    %31 = arith.subf %10, %6 : vector<8x128xf32>
    %32 = arith.mulf %30, %31 : vector<8x128xf32>
    %33 = arith.subf %16, %12 : vector<8x128xf32>
    %34 = arith.subf %18, %14 : vector<8x128xf32>
    %35 = arith.mulf %33, %34 : vector<8x128xf32>
    %36 = arith.addf %32, %35 : vector<8x128xf32>
    %37 = arith.subf %36, %29 : vector<8x128xf32>
    %cst_22 = arith.constant 9.99999997E-7 : f32
    %38 = vector.broadcast %cst_22 : f32 to vector<8x128xf32>
    %39 = arith.maximumf %37, %38 : vector<8x128xf32>
    %40 = arith.divf %29, %39 : vector<8x128xf32>
    %41 = arith.addf %4, %8 : vector<8x128xf32>
    %cst_23 = arith.constant 5.000000e-01 : f32
    %42 = vector.broadcast %cst_23 : f32 to vector<8x128xf32>
    %43 = arith.mulf %41, %42 : vector<8x128xf32>
    %44 = arith.addf %12, %16 : vector<8x128xf32>
    %cst_24 = arith.constant 5.000000e-01 : f32
    %45 = vector.broadcast %cst_24 : f32 to vector<8x128xf32>
    %46 = arith.mulf %44, %45 : vector<8x128xf32>
    %47 = arith.subf %43, %46 : vector<8x128xf32>
    %48 = arith.addf %6, %10 : vector<8x128xf32>
    %cst_25 = arith.constant 5.000000e-01 : f32
    %49 = vector.broadcast %cst_25 : f32 to vector<8x128xf32>
    %50 = arith.mulf %48, %49 : vector<8x128xf32>
    %51 = arith.addf %14, %18 : vector<8x128xf32>
    %cst_26 = arith.constant 5.000000e-01 : f32
    %52 = vector.broadcast %cst_26 : f32 to vector<8x128xf32>
    %53 = arith.mulf %51, %52 : vector<8x128xf32>
    %54 = arith.subf %50, %53 : vector<8x128xf32>
    %55 = arith.mulf %47, %47 : vector<8x128xf32>
    %56 = arith.mulf %54, %54 : vector<8x128xf32>
    %57 = arith.addf %55, %56 : vector<8x128xf32>
    %58 = math.sqrt %57 : vector<8x128xf32>
    %59 = arith.addf %32, %35 : vector<8x128xf32>
    %60 = math.sqrt %59 : vector<8x128xf32>
    %cst_27 = arith.constant 9.99999997E-7 : f32
    %61 = vector.broadcast %cst_27 : f32 to vector<8x128xf32>
    %62 = arith.maximumf %60, %61 : vector<8x128xf32>
    %63 = arith.subf %8, %4 : vector<8x128xf32>
    %64 = arith.subf %10, %6 : vector<8x128xf32>
    %65 = arith.divf %63, %64 : vector<8x128xf32>
    %66 = arith.subf %16, %12 : vector<8x128xf32>
    %67 = arith.subf %18, %14 : vector<8x128xf32>
    %68 = arith.divf %66, %67 : vector<8x128xf32>
    %69 = arith.subf %65, %68 : vector<8x128xf32>
    %70 = math.absf %69 : vector<8x128xf32>
    %cst_28 = arith.constant 1.000000e+00 : f32
    %71 = vector.broadcast %cst_28 : f32 to vector<8x128xf32>
    %72 = arith.subf %71, %40 : vector<8x128xf32>
    %73 = arith.divf %58, %62 : vector<8x128xf32>
    %74 = arith.addf %72, %73 : vector<8x128xf32>
    %75 = arith.addf %74, %70 : vector<8x128xf32>
    %c1_i32 = arith.constant 1 : i32
    %76 = arith.muli %arg0, %c1_i32 : i32
    %77 = arith.addi %76, %arg1 : i32
    %78 = tpu.iota {dimensions = array<i32: 0>} : vector<8x128xi32>
    %79 = tpu.iota {dimensions = array<i32: 1>} : vector<8x128xi32>
    %c8_i32 = arith.constant 8 : i32
    %80 = arith.muli %77, %c8_i32 : i32
    %81 = vector.broadcast %80 : i32 to vector<8x128xi32>
    %82 = arith.addi %81, %78 : vector<8x128xi32>
    %c128_i32 = arith.constant 128 : i32
    %83 = vector.broadcast %c128_i32 : i32 to vector<8x128xi32>
    %84 = arith.muli %82, %83 : vector<8x128xi32>
    %85 = arith.addi %84, %79 : vector<8x128xi32>
    %c0_29 = arith.constant 0 : index
    %86 = memref.load %arg2[%c0_29] : memref<1xi32, #tpu.memory_space<smem>>
    %87 = vector.broadcast %86 : i32 to vector<8x128xi32>
    %88 = arith.cmpi slt, %85, %87 : vector<8x128xi32>
    %cst_30 = arith.constant 0.000000e+00 : f32
    %89 = vector.broadcast %cst_30 : f32 to vector<8x128xf32>
    %90 = arith.select %88, %75, %89 : vector<8x128xi1>, vector<8x128xf32>
    %c0_31 = arith.constant 0 : index
    %c0_32 = arith.constant 0 : index
    %91 = memref.load %arg5[%c0_31, %c0_32] : memref<1x1xf32, #tpu.memory_space<smem>>
    %92 = vector.shape_cast %90 : vector<8x128xf32> to vector<1x8x128xf32>
    %cst_33 = arith.constant dense<0.000000e+00> : vector<1xf32>
    %93 = vector.multi_reduction <add>, %92, %cst_33 [1, 2] : vector<1x8x128xf32> to vector<1xf32>
    %94 = vector.shape_cast %93 : vector<1xf32> to vector<1x1x1xf32>
    %95 = vector.extract %94[0, 0, 0] : f32 from vector<1x1x1xf32>
    %96 = arith.addf %91, %95 : f32
    %c0_34 = arith.constant 0 : index
    %c0_35 = arith.constant 0 : index
    %97 = memref.load %arg5[%c0_34, %c0_35] : memref<1x1xf32, #tpu.memory_space<smem>>
    memref.store %96, %arg5[%c0_34, %c0_35] : memref<1x1xf32, #tpu.memory_space<smem>>
    return
  }
  func.func @transform_0(%arg0: i32, %arg1: i32, %arg2: memref<1xi32, #tpu.memory_space<smem>>) -> (i32, i32, i32) {
    %c1_i32 = arith.constant 1 : i32
    %0 = arith.muli %arg0, %c1_i32 : i32
    %1 = arith.addi %0, %arg1 : i32
    %c0_i32 = arith.constant 0 : i32
    %c0_i32_0 = arith.constant 0 : i32
    %c0_i32_1 = arith.constant 0 : i32
    return %c0_i32, %1, %c0_i32_0 : i32, i32, i32
  }
  func.func @transform_1(%arg0: i32, %arg1: i32, %arg2: memref<1xi32, #tpu.memory_space<smem>>) -> (i32, i32, i32) {
    %c1_i32 = arith.constant 1 : i32
    %0 = arith.muli %arg0, %c1_i32 : i32
    %1 = arith.addi %0, %arg1 : i32
    %c0_i32 = arith.constant 0 : i32
    %c0_i32_0 = arith.constant 0 : i32
    %c0_i32_1 = arith.constant 0 : i32
    return %c0_i32, %1, %c0_i32_0 : i32, i32, i32
  }
  func.func @transform_2(%arg0: i32, %arg1: i32, %arg2: memref<1xi32, #tpu.memory_space<smem>>) -> (i32, i32) {
    %c0_i32 = arith.constant 0 : i32
    %c0_i32_0 = arith.constant 0 : i32
    return %arg0, %c0_i32 : i32, i32
  }
}

</mosaic_0001>

<bundles_post_ra>
// kernel: ciou_loss.1
= control target key start
LH: loop header
LB: loop body
LE: loop exit
PB: predicated region body
PF: predicated region fallthrough
CT: control target
= control target key end

     0   :  { %s399_s0 = inlined_call_operand.<no memory space> [shape: s32[1], index: 0, kind: input, shape index: {}]   ;;  %s400_s1 = inlined_call_operand.vmem [shape: f32[4,8,128], index: 1, kind: input, shape index: {}]   ;;  %s401_s2 = inlined_call_operand.vmem [shape: f32[4,8,128], index: 2, kind: input, shape index: {}]   ;;  %s402_s3 = inlined_call_operand.hbm [shape: f32[1,1], index: 3, kind: output, shape index: {}]  }
   0x1   :  { %v54_v0 = vld [vmem:[%s400_s1] sm:$0xff]  ;;  %v243_v1 = vld [vmem:[%s400_s1 + $0x8] sm:$0xff]  ;;  %v244_v2 = vld [vmem:[%s400_s1 + $0x10] sm:$0xff] }
   0x2   :  { %v245_v3 = vld [vmem:[%s400_s1 + $0x18] sm:$0xff]  ;;  %v61_v4 = vld [vmem:[%s401_s2] sm:$0xff]  ;;  %v246_v5 = vld [vmem:[%s401_s2 + $0x8] sm:$0xff]  ;;  %v318_v6 = vsub.f32 %v244_v2, %v54_v0  ;;  %v101_v7 = vadd.f32 %v244_v2, %v54_v0 }
   0x3   :  { %v247_v8 = vld [vmem:[%s401_s2 + $0x10] sm:$0xff]  ;;  %v248_v9 = vld [vmem:[%s401_s2 + $0x18] sm:$0xff]  ;;  %v69_v10 = vmax.f32 %v54_v0, %v61_v4  ;;  %v73_v11 = vmax.f32 %v243_v1, %v246_v5  ;;  %v326_v12 = vsub.f32 %v245_v3, %v243_v1  ;;  %v106_v13 = vadd.f32 %v245_v3, %v243_v1 }
   0x4   :  { %9 = vsyncpa [#allocation5], 0  ;;  %v68_v14 = vmin.f32 %v244_v2, %v247_v8  ;;  %v72_v15 = vmin.f32 %v245_v3, %v248_v9  ;;  %v328_v16 = vsub.f32 %v247_v8, %v61_v4  ;;  %v330_v17 = vsub.f32 %v248_v9, %v246_v5  ;;  %s221_s30 = sshll.u32 %s402_s3, 4  ;;  %s222_s30 = int_to_ptr.hbm [resolvable:$true] %s221_s30 }
   0x5   :  { %v79_v18 = vmul.f32 %v326_v12, %v318_v6  ;;  %v102_v19 = vmul.f32 0.5, %v101_v7  ;;  %v103_v20 = vadd.f32 %v247_v8, %v61_v4  ;;  %v107_v21 = vmul.f32 0.5, %v106_v13 }
   0x6   :  { %v70_v22 = vsub.f32 %v68_v14, %v69_v10  ;;  %v74_v23 = vsub.f32 %v72_v15, %v73_v11  ;;  %v82_v24 = vmul.f32 %v330_v17, %v328_v16  ;;  %v108_v25 = vadd.f32 %v248_v9, %v246_v5 }
   0x7   :  { %v104_v26 = vmul.f32 0.5, %v103_v20  ;;  %253 = vrcp.f32 %v326_v12  ;;  %vm144_vm2 = vweird.f32 %v326_v12  ;;  %v148_v63 = vand.u32 2147483647, %v326_v12 }
   0x8   :  { %v71_v27 = vmax.f32 %v70_v22, 0.0  ;;  %v75_v28 = vmax.f32 %v74_v23, 0.0  ;;  %v83_v29 = vadd.f32 %v82_v24, %v79_v18  ;;  %v109_v30 = vmul.f32 0.5, %v108_v25 }
   0x9   :  { %v105_v31 = vsub.f32 %v102_v19, %v104_v26  ;;  %vm159_vm4 = vweird.f32 %v330_v17  ;;  %v150_v2 = vand.u32 2147483648, %v326_v12  ;;  %v165_v3 = vand.u32 2147483648, %v330_v17 }
   0xa   :  { %v337_v32 = vmul.f32 %v75_v28, %v71_v27  ;;  %v110_v33 = vsub.f32 %v107_v21, %v109_v30  ;;  %255 = vrsqrt.f32 %v83_v29  ;;  %vm133_vm0 = vcmp.eq.f32.partialorder %v83_v29, inf }
   0xb   :  { %v111_v34 = vmul.f32 %v105_v31, %v105_v31  ;;  %257 = vrcp.f32 %v330_v17  ;;  %v136_v57 = vand.u32 2147483648, %v83_v29  ;;  %vm135_vm1 = vcmp.eq.f32.partialorder %v83_v29, 0.0 }
   0xc   :  { %v84_v35 = vsub.f32 %v83_v29, %v337_v32  ;;  %v112_v36 = vmul.f32 %v110_v33, %v110_v33  ;;  %v163_v9 = vand.u32 2147483647, %v330_v17  ;;  %v151_v15 = vor.u32 1.1754944e-38, %v150_v2 }
   0xd   :  { %v345_v39 = vpop.eup %253  ;;  %v166_v18 = vor.u32 1.1754944e-38, %v165_v3  ;;  %vm149_vm11 = vcmp.eq.f32.partialorder %v148_v63, 8.507059e+37  ;;  %v190_v22 = vlaneseq }
   0xe   :  { %v341_v37 = vmax.f32 %v84_v35, 1e-06  ;;  %v343_v38 = vadd.f32 %v112_v36, %v111_v34  ;;  %v140_v44 = vmul.f32 %v345_v39, %v326_v12  ;;  %vm145_vm3 = vweird.f32 %v345_v39 }
   0xf   :  { %vm362_vm6 = vmor %vm144_vm2, %vm145_vm3  ;;  %vm164_vm12 = vcmp.eq.f32.partialorder %v163_v9, 8.507059e+37  ;;  %v191_v30 = vshrl.u32 %v190_v22, 7 }
  0x10   :  { %v256_v40 = vpop.eup %255  ;;  %259 = vrcp.f32 %v341_v37  ;;  %v141_v52 = vsub.f32 1.0, %v140_v44  ;;  %vm91_vm7 = vweird.f32 %v341_v37  ;;  %v97_v12 = vand.u32 2147483648, %v341_v37 }
  0x11   :  { %v258_v41 = vpop.eup %257  ;;  %261 = vrsqrt.f32 %v343_v38  ;;  %v127_v42 = vmul.f32 %v256_v40, %v83_v29  ;;  %v95_v14 = vand.u32 2147483647, %v341_v37  ;;  %vm121_vm14 = vcmp.eq.f32.partialorder %v343_v38, inf }
  0x12   :  { %v155_v45 = vmul.f32 %v258_v41, %v330_v17  ;;  %v142_v59 = vmul.f32 %v345_v39, %v141_v52  ;;  %vm160_vm5 = vweird.f32 %v258_v41  ;;  %v98_v23 = vor.u32 1.1754944e-38, %v97_v12 }
  0x13   :  { %v128_v43 = vmul.f32 %v256_v40, %v127_v42  ;;  %vm368_vm9 = vmor %vm159_vm4, %vm160_vm5  ;;  %vm96_vm13 = vcmp.eq.f32.partialorder %v95_v14, 8.507059e+37  ;;  %v193_v44 = vand.u32 127, %v190_v22 }
  0x14   :  { %v156_v53 = vsub.f32 1.0, %v155_v45  ;;  %v143_v5 = vadd.f32 %v345_v39, %v142_v59 }
  0x15   :  { %v129_v47 = vmul.f32 0.5, %v128_v43 }
  0x16   :  { %v260_v46 = vpop.eup %259  ;;  %v157_v60 = vmul.f32 %v258_v41, %v156_v53  ;;  %v147_v17 = vsel %vm362_vm6, %v345_v39, %v143_v5  ;;  %v124_v39 = vand.u32 2147483648, %v343_v38 }
  0x17   :  { %v262_v48 = vpop.eup %261  ;;  %v87_v49 = vmul.f32 %v260_v46, %v341_v37  ;;  %v130_v51 = vsub.f32 1.5, %v129_v47  ;;  %vm92_vm8 = vweird.f32 %v260_v46  ;;  %v152_v25 = vsel %vm149_vm11, %v151_v15, %v147_v17 }
  0x18   :  { %v115_v50 = vmul.f32 %v262_v48, %v343_v38  ;;  %v158_v8 = vadd.f32 %v258_v41, %v157_v60  ;;  %vm374_vm10 = vmor %vm91_vm7, %vm92_vm8  ;;  %v153_v33 = vmul.f32 %v152_v25, %v318_v6  ;;  %v197_v6 = vmul.u32 128, %v191_v30 }
  0x19   :  { %v131_v55 = vmul.f32 %v256_v40, %v130_v51  ;;  %v88_v56 = vsub.f32 1.0, %v87_v49 }
  0x1a   :  { %v116_v54 = vmul.f32 %v262_v48, %v115_v50  ;;  %v162_v20 = vsel %vm368_vm9, %v258_v41, %v158_v8  ;;  %v198_v50 = vadd.s32 %v197_v6, %v193_v44 }
  0x1b   :  { %v132_v58 = vmul.f32 %v131_v55, %v83_v29  ;;  %v89_v0 = vmul.f32 %v260_v46, %v88_v56  ;;  %v167_v26 = vsel %vm164_vm12, %v166_v18, %v162_v20 }
  0x1c   :  { %v117_v61 = vmul.f32 0.5, %v116_v54  ;;  %v168_v34 = vmul.f32 %v167_v26, %v328_v16 }
  0x1d   :  { %v134_v62 = vsel %vm133_vm0, %v83_v29, %v132_v58  ;;  %v90_v13 = vadd.f32 %v260_v46, %v89_v0 }
  0x1e   :  { %v137_v1 = vsel %vm135_vm1, %v136_v57, %v134_v62  ;;  %v118_v10 = vsub.f32 1.5, %v117_v61  ;;  %vm123_vm1 = vcmp.eq.f32.partialorder %v343_v38, 0.0  ;;  %v169_v45 = vsub.f32 %v153_v33, %v168_v34 }
  0x1f   :  { %v138_v4 = vmax.f32 %v137_v1, 1e-06  ;;  %v94_v24 = vsel %vm374_vm10, %v260_v46, %v90_v13 }
  0x20   :  { %v119_v21 = vmul.f32 %v262_v48, %v118_v10  ;;  %v99_v31 = vsel %vm96_vm13, %v98_v23, %v94_v24  ;;  %v170_v51 = vand.u32 2147483647, %v169_v45 }
  0x21   :  { %263 = vrcp.f32 %v138_v4  ;;  %v183_v35 = vand.u32 2147483648, %v138_v4  ;;  %vm177_vm15 = vweird.f32 %v138_v4  ;;  %v181_v37 = vand.u32 2147483647, %v138_v4 }
  0x22   :  { %v120_v28 = vmul.f32 %v119_v21, %v343_v38  ;;  %v100_v40 = vmul.f32 %v99_v31, %v337_v32  ;;  %v200_v32 = vstv %s399_s0  ;;  %s279_s0 = smov [#allocation4]  }
  0x23   :  { %v184_v43 = vor.u32 1.1754944e-38, %v183_v35  ;;  %vm182_vm3 = vcmp.eq.f32.partialorder %v181_v37, 8.507059e+37  ;;  %vm201_vm4 = vcmp.lt.s32.totalorder %v198_v50, %v200_v32 }
  0x24   :  { %v122_v41 = vsel %vm121_vm14, %v343_v38, %v120_v28  ;;  %v171_v47 = vsub.f32 1.0, %v100_v40 }
  0x25   :  { %v125_v46 = vsel %vm123_vm1, %v124_v39, %v122_v41 }
  0x27   :  { %v264_v27 = vpop.eup %263 }
  0x28   :  { %v173_v29 = vmul.f32 %v264_v27, %v138_v4  ;;  %vm178_vm0 = vweird.f32 %v264_v27 }
  0x29   :  { %vm179_vm2 = vmor %vm177_vm15, %vm178_vm0 }
  0x2a   :  { %v174_v36 = vsub.f32 1.0, %v173_v29 }
  0x2c   :  { %v175_v42 = vmul.f32 %v264_v27, %v174_v36 }
  0x2e   :  { %v176_v16 = vadd.f32 %v264_v27, %v175_v42 }
  0x30   :  { %v180_v48 = vsel %vm179_vm2, %v264_v27, %v176_v16 }
  0x31   :  { %v185_v49 = vsel %vm182_vm3, %v184_v43, %v180_v48 }
  0x32   :  { %v186_v52 = vmul.f32 %v185_v49, %v125_v46 }
  0x34   :  { %v187_v38 = vadd.f32 %v186_v52, %v171_v47 }
  0x36   :  { %v188_v53 = vadd.f32 %v187_v38, %v170_v51 }
  0x38   :  { %v202_v54 = vsel %vm201_vm4, %v188_v53, 0.0 }
  0x39   :  { %204 = vadd.xlane.f32.xlu0 %v202_v54 }
  0xac   :  { %v205_v55 = vpop.xlane.xlu0 %204 }
  0xad   :  { %v206_v56 = vrot.slane %v205_v55, 4 }
  0xaf   :  { %v207_v57 = vadd.f32 %v206_v56, %v205_v55 }
  0xb1   :  { %v208_v58 = vrot.slane %v207_v57, 2 }
  0xb3   :  { %v209_v59 = vadd.f32 %v208_v58, %v207_v57 }
  0xb5   :  { %v210_v60 = vrot.slane %v209_v59, 1 }
  0xb7   :  { %v211_v61 = vadd.f32 %v210_v60, %v209_v59 }
  0xb9   :  { %249 = vpush %v211_v61 }
  0xea   :  { %s250_s4 = spop %249 }
  0xeb   :  { %215 = sst [smem:[#allocation4]] %s250_s4 }
  0xec   :  { %224 = dma.smem_to_hbm %s279_s0, 16, %s222_s30, [#allocation5]  }
  0xed   :  { %277 = dma.done.wait [#allocation5], 16  }
  0xee   :  { %278 = vsyncadd [#allocation5], 4294967280 }
  0xef   :  { %229 = sfence }
  0xf0   :  { %230 = vsyncpa [#allocation5], 1 }

</bundles_post_ra>
